<compile_context>
chip_gen: v7x
topology: tpu7x:2x2x1
jax: 0.10.0
libtpu: 0.0.40
codegen_flags: <defaults>
</compile_context>

<pallas_src>
import math
import jax
import jax.numpy as jnp
import numpy as np
from jax.experimental import pallas as pl
from jax.experimental.pallas import tpu as pltpu

# ---------------- configuration (small, consistent with the module) -----------
Z_DIM = 32
C_DIM = 8
W_DIM = 32
NUM_WS = 4
NUM_LAYERS = 8            # module default
EMBED = W_DIM             # embed_features defaults to w_dim
LAYER_FEATURES = W_DIM    # layer_features defaults to w_dim
IN0 = Z_DIM + EMBED       # fc0 input features (64)
LR_MULT = 0.01
LRELU_SLOPE = 0.2
LRELU_GAIN = math.sqrt(2.0)   # bias_act def_gain for 'lrelu'
EPS = 1e-8
BATCH = 8


def _norm2nd(x):
    # x * rsqrt(mean(x^2, axis=1, keepdims=True) + eps)  — true feature count
    return x * jax.lax.rsqrt(jnp.mean(x * x, axis=1, keepdims=True) + EPS)


def _lrelu(x):
    return jnp.where(x < 0, LRELU_SLOPE * x, x) * LRELU_GAIN


# ------------------------------- Pallas kernel --------------------------------
def mapping_kernel(z_ref, c_ref, w_emb_ref, b_emb_ref,
                   w_fc0_ref, b_fc0_ref, w_rest_ref, b_rest_ref,
                   out_ref, cat_ref):
    # Activations in f32 (VPU/EUP math); bf16 only at MXU inputs.
    x = _norm2nd(z_ref[...].astype(jnp.float32))

    # embed (linear FC): y = c @ W_emb + b_emb, then 2nd-moment normalize
    y = (jnp.dot(c_ref[...].astype(jnp.bfloat16), w_emb_ref[...],
                 preferred_element_type=jnp.float32)
         + b_emb_ref[...])
    y = _norm2nd(y)

    # fc0 acts on concat([x, y], dim=1): stage into a (TILE_B, 64) VMEM scratch
    # so it is a single K=64 MXU push (one push/pop instead of two + VPU add).
    cat_ref[:, 0:Z_DIM] = x
    cat_ref[:, Z_DIM:IN0] = y
    h = (jnp.dot(cat_ref[...].astype(jnp.bfloat16), w_fc0_ref[...],
                 preferred_element_type=jnp.float32)
         + b_fc0_ref[...])
    h = _lrelu(h)

    # fc1 .. fc{NUM_LAYERS-1}: stacked weights, statically unrolled loop
    for idx in range(NUM_LAYERS - 1):
        h = (jnp.dot(h.astype(jnp.bfloat16), w_rest_ref[idx],
                     preferred_element_type=jnp.float32)
             + b_rest_ref[idx])
        h = _lrelu(h)

    # broadcast x.unsqueeze(1).repeat([1, num_ws, 1]) as a lane-dense 128-wide
    # row: [h | h | h | h]; wrapper reshapes to (B, NUM_WS, W_DIM).
    out_ref[...] = jnp.tile(h, (1, NUM_WS))


def _round_up(n, m):
    return ((n + m - 1) // m) * m


def mapping_network_forward(z, c, params, tile_b=256):
    B = z.shape[0]
    # Batch tile: multiple of 8 sublanes; 256 keeps v7x's 64 MiB VMEM trivially
    # satisfied (tiles + double buffering are a few hundred KB; weights ~45 KB).
    TILE_B = min(tile_b, _round_up(B, 8))
    grid = (pl.cdiv(B, TILE_B),)

    out_flat = pl.pallas_call(
        mapping_kernel,
        out_shape=jax.ShapeDtypeStruct((B, NUM_WS * W_DIM), jnp.float32),
        grid_spec=pltpu.PrefetchScalarGridSpec(
            num_scalar_prefetch=0,
            grid=grid,
            in_specs=[
                pl.BlockSpec((TILE_B, Z_DIM), lambda i: (i, 0)),          # z
                pl.BlockSpec((TILE_B, C_DIM), lambda i: (i, 0)),          # c
                pl.BlockSpec((C_DIM, EMBED), lambda i: (0, 0)),           # w_emb  (resident)
                pl.BlockSpec((1, EMBED), lambda i: (0, 0)),               # b_emb  (resident)
                pl.BlockSpec((IN0, W_DIM), lambda i: (0, 0)),             # w_fc0  (resident)
                pl.BlockSpec((1, W_DIM), lambda i: (0, 0)),               # b_fc0  (resident)
                pl.BlockSpec((NUM_LAYERS - 1, LAYER_FEATURES, W_DIM),
                             lambda i: (0, 0, 0)),                        # w_rest (resident)
                pl.BlockSpec((NUM_LAYERS - 1, 1, W_DIM),
                             lambda i: (0, 0, 0)),                        # b_rest (resident)
            ],
            out_specs=pl.BlockSpec((TILE_B, NUM_WS * W_DIM), lambda i: (i, 0)),
            scratch_shapes=[pltpu.VMEM((TILE_B, IN0), jnp.float32)],
        ),
        compiler_params=pltpu.CompilerParams(
            dimension_semantics=("parallel",)),
    )(z, c,
      params["w_emb"], params["b_emb"],
      params["w_fc0"], params["b_fc0"],
      params["w_rest"], params["b_rest"])

    # Free, contiguous reshape back to the module's (B, num_ws, w_dim) layout.
    return out_flat.reshape(B, NUM_WS, W_DIM)


# ------------------------- parameter construction (glue) ----------------------
def init_params(key):
    """Deterministic init mirroring the PyTorch module, with runtime gains folded in.

    Effective weight = (randn([out,in]) / lr_mult) * (lr_mult / sqrt(in)), transposed
    to [in, out] for right-multiplication, stored bf16 (MXU-native).
    Effective bias = bias_init * lr_mult = 0 (kept f32).
    """
    keys = jax.random.split(key, 1 + NUM_LAYERS)

    # embed: FullyConnectedLayer(C_DIM, EMBED), linear, lr_mult=1
    w_raw = jax.random.normal(keys[0], (EMBED, C_DIM), jnp.float32) / 1.0
    w_emb = (w_raw * (1.0 / math.sqrt(C_DIM))).T.astype(jnp.bfloat16)   # [C_DIM, EMBED]
    b_emb = jnp.zeros((1, EMBED), jnp.float32)

    # fc0: in = Z_DIM + EMBED, out = W_DIM, lrelu, lr_mult=0.01
    w_raw = jax.random.normal(keys[1], (W_DIM, IN0), jnp.float32) / LR_MULT
    w_fc0 = (w_raw * (LR_MULT / math.sqrt(IN0))).T.astype(jnp.bfloat16)  # [IN0, W_DIM]
    b_fc0 = jnp.zeros((1, W_DIM), jnp.float32)                           # 0 * bias_gain

    # fc1..fc7: [W_DIM -> W_DIM]
    w_rest, b_rest = [], []
    for idx in range(NUM_LAYERS - 1):
        w_raw = jax.random.normal(keys[2 + idx], (W_DIM, LAYER_FEATURES), jnp.float32) / LR_MULT
        w_rest.append((w_raw * (LR_MULT / math.sqrt(LAYER_FEATURES))).T.astype(jnp.bfloat16))
        b_rest.append(jnp.zeros((1, W_DIM), jnp.float32))
    w_rest = jnp.stack(w_rest)                                           # [7, W_DIM, W_DIM] bf16
    b_rest = jnp.stack(b_rest)                                           # [7, 1, W_DIM] f32

    return {"w_emb": w_emb, "b_emb": b_emb,
            "w_fc0": w_fc0, "b_fc0": b_fc0,
            "w_rest": w_rest, "b_rest": b_rest}


# ------------------------------- pure-JAX reference ---------------------------
def reference_forward(z, c, params):
    # Mirrors the kernel's numerics exactly (bf16 MXU inputs, f32 accumulation).
    x = _norm2nd(z.astype(jnp.float32))
    y = (jnp.dot(c.astype(jnp.bfloat16), params["w_emb"],
                 preferred_element_type=jnp.float32) + params["b_emb"])
    y = _norm2nd(y)
    h = jnp.concatenate([x, y], axis=1)
    h = (jnp.dot(h.astype(jnp.bfloat16), params["w_fc0"],
                 preferred_element_type=jnp.float32) + params["b_fc0"])
    h = _lrelu(h)
    for idx in range(NUM_LAYERS - 1):
        h = (jnp.dot(h.astype(jnp.bfloat16), params["w_rest"][idx],
                     preferred_element_type=jnp.float32) + params["b_rest"][idx])
        h = _lrelu(h)
    return jnp.broadcast_to(h[:, None, :], (z.shape[0], NUM_WS, W_DIM))


# TODO(synk): training-time w_avg EMA update and truncation (psi != 1) paths are
# stateful / config-gated and are not exercised here (eval, truncation_psi=1).

if __name__ == "__main__":
    key = jax.random.PRNGKey(0)
    kz, kc, kp = jax.random.split(key, 3)
    z = jax.random.normal(kz, (BATCH, Z_DIM), jnp.float32)
    c = jax.random.normal(kc, (BATCH, C_DIM), jnp.float32)
    params = init_params(kp)

    out = mapping_network_forward(z, c, params)
    out = jax.block_until_ready(out)

    ref = reference_forward(z, c, params)
    np.testing.assert_allclose(np.asarray(out), np.asarray(ref), rtol=1e-3, atol=1e-3)
    assert out.shape == (BATCH, NUM_WS, W_DIM) and out.dtype == jnp.float32

    print("KERNEL_OK")
</pallas_src>

<mosaic_0001>
module attributes {stable_mosaic.version = 11 : i64} {
  func.func @mapping_kernel(%arg0: i32, %arg1: memref<8x32xf32, #tpu.memory_space<vmem>>, %arg2: memref<8x8xf32, #tpu.memory_space<vmem>>, %arg3: memref<8x32xbf16, #tpu.memory_space<vmem>>, %arg4: memref<1x32xf32, #tpu.memory_space<vmem>>, %arg5: memref<64x32xbf16, #tpu.memory_space<vmem>>, %arg6: memref<1x32xf32, #tpu.memory_space<vmem>>, %arg7: memref<7x32x32xbf16, #tpu.memory_space<vmem>>, %arg8: memref<7x1x32xf32, #tpu.memory_space<vmem>>, %arg9: memref<8x128xf32, #tpu.memory_space<vmem>>, %arg10: memref<8x64xf32, #tpu.memory_space<vmem>>) attributes {dimension_semantics = [#tpu.dimension_semantics<parallel>], iteration_bounds = array<i64: 1>, scalar_prefetch = 0 : i64, scratch_operands = 1 : i64, tpu.core_type = #tpu.core_type<tc>, window_params = [{transform_indices = @transform_0, window_bounds = array<i64: 8, 32>}, {transform_indices = @transform_1, window_bounds = array<i64: 8, 8>}, {pipeline_mode = #tpu.pipeline_mode<synchronous>, transform_indices = @transform_2, window_bounds = array<i64: 8, 32>}, {pipeline_mode = #tpu.pipeline_mode<synchronous>, transform_indices = @transform_3, window_bounds = array<i64: 1, 32>}, {pipeline_mode = #tpu.pipeline_mode<synchronous>, transform_indices = @transform_4, window_bounds = array<i64: 64, 32>}, {pipeline_mode = #tpu.pipeline_mode<synchronous>, transform_indices = @transform_5, window_bounds = array<i64: 1, 32>}, {pipeline_mode = #tpu.pipeline_mode<synchronous>, transform_indices = @transform_6, window_bounds = array<i64: 7, 32, 32>}, {pipeline_mode = #tpu.pipeline_mode<synchronous>, transform_indices = @transform_7, window_bounds = array<i64: 7, 1, 32>}, {transform_indices = @transform_8, window_bounds = array<i64: 8, 128>}]} {
    %c0 = arith.constant 0 : index
    %c0_0 = arith.constant 0 : index
    %0 = vector.load %arg1[%c0, %c0_0] : memref<8x32xf32, #tpu.memory_space<vmem>>, vector<8x32xf32>
    %1 = arith.mulf %0, %0 : vector<8x32xf32>
    %cst = arith.constant dense<0.000000e+00> : vector<8xf32>
    %2 = vector.multi_reduction <add>, %1, %cst [1] : vector<8x32xf32> to vector<8xf32>
    %3 = vector.shape_cast %2 : vector<8xf32> to vector<8x1xf32>
    %cst_1 = arith.constant 3.200000e+01 : f32
    %4 = vector.broadcast %cst_1 : f32 to vector<8x1xf32>
    %5 = arith.divf %3, %4 : vector<8x1xf32>
    %cst_2 = arith.constant 9.99999993E-9 : f32
    %6 = vector.broadcast %cst_2 : f32 to vector<8x1xf32>
    %7 = arith.addf %5, %6 : vector<8x1xf32>
    %8 = math.rsqrt %7 : vector<8x1xf32>
    %9 = vector.broadcast %8 : vector<8x1xf32> to vector<8x32xf32>
    %10 = arith.mulf %0, %9 : vector<8x32xf32>
    %c0_3 = arith.constant 0 : index
    %c0_4 = arith.constant 0 : index
    %11 = vector.load %arg2[%c0_3, %c0_4] : memref<8x8xf32, #tpu.memory_space<vmem>>, vector<8x8xf32>
    %12 = arith.truncf %11 : vector<8x8xf32> to vector<8x8xbf16>
    %c0_5 = arith.constant 0 : index
    %c0_6 = arith.constant 0 : index
    %13 = vector.load %arg3[%c0_5, %c0_6] : memref<8x32xbf16, #tpu.memory_space<vmem>>, vector<8x32xbf16>
    %cst_7 = arith.constant dense<0.000000e+00> : vector<8x32xf32>
    %14 = tpu.matmul %12, %13, %cst_7 {dimension_numbers = #tpu.dot_dimension_numbers<[1], [0], [0], [1], [0, 0, 1, 1], [], []>} : vector<8x8xbf16>, vector<8x32xbf16>, vector<8x32xf32> -> vector<8x32xf32>
    %c0_8 = arith.constant 0 : index
    %c0_9 = arith.constant 0 : index
    %15 = vector.load %arg4[%c0_8, %c0_9] : memref<1x32xf32, #tpu.memory_space<vmem>>, vector<1x32xf32>
    %16 = vector.broadcast %15 : vector<1x32xf32> to vector<8x32xf32>
    %17 = arith.addf %14, %16 : vector<8x32xf32>
    %18 = arith.mulf %17, %17 : vector<8x32xf32>
    %cst_10 = arith.constant dense<0.000000e+00> : vector<8xf32>
    %19 = vector.multi_reduction <add>, %18, %cst_10 [1] : vector<8x32xf32> to vector<8xf32>
    %20 = vector.shape_cast %19 : vector<8xf32> to vector<8x1xf32>
    %cst_11 = arith.constant 3.200000e+01 : f32
    %21 = vector.broadcast %cst_11 : f32 to vector<8x1xf32>
    %22 = arith.divf %20, %21 : vector<8x1xf32>
    %cst_12 = arith.constant 9.99999993E-9 : f32
    %23 = vector.broadcast %cst_12 : f32 to vector<8x1xf32>
    %24 = arith.addf %22, %23 : vector<8x1xf32>
    %25 = math.rsqrt %24 : vector<8x1xf32>
    %26 = vector.broadcast %25 : vector<8x1xf32> to vector<8x32xf32>
    %27 = arith.mulf %17, %26 : vector<8x32xf32>
    %c0_13 = arith.constant 0 : index
    %c0_14 = arith.constant 0 : index
    %28 = vector.load %arg10[%c0_13, %c0_14] : memref<8x64xf32, #tpu.memory_space<vmem>>, vector<8x32xf32>
    tpu.vector_store %arg10[%c0_13, %c0_14], %10 {strides = array<i32>} : memref<8x64xf32, #tpu.memory_space<vmem>>, vector<8x32xf32>,
    %c0_15 = arith.constant 0 : index
    %c32 = arith.constant 32 : index
    %29 = vector.load %arg10[%c0_15, %c32] : memref<8x64xf32, #tpu.memory_space<vmem>>, vector<8x32xf32>
    tpu.vector_store %arg10[%c0_15, %c32], %27 {strides = array<i32>} : memref<8x64xf32, #tpu.memory_space<vmem>>, vector<8x32xf32>,
    %c0_16 = arith.constant 0 : index
    %c0_17 = arith.constant 0 : index
    %30 = vector.load %arg10[%c0_16, %c0_17] : memref<8x64xf32, #tpu.memory_space<vmem>>, vector<8x64xf32>
    %31 = arith.truncf %30 : vector<8x64xf32> to vector<8x64xbf16>
    %c0_18 = arith.constant 0 : index
    %c0_19 = arith.constant 0 : index
    %32 = vector.load %arg5[%c0_18, %c0_19] : memref<64x32xbf16, #tpu.memory_space<vmem>>, vector<64x32xbf16>
    %cst_20 = arith.constant dense<0.000000e+00> : vector<8x32xf32>
    %33 = tpu.matmul %31, %32, %cst_20 {dimension_numbers = #tpu.dot_dimension_numbers<[1], [0], [0], [1], [0, 0, 1, 1], [], []>} : vector<8x64xbf16>, vector<64x32xbf16>, vector<8x32xf32> -> vector<8x32xf32>
    %c0_21 = arith.constant 0 : index
    %c0_22 = arith.constant 0 : index
    %34 = vector.load %arg6[%c0_21, %c0_22] : memref<1x32xf32, #tpu.memory_space<vmem>>, vector<1x32xf32>
    %35 = vector.broadcast %34 : vector<1x32xf32> to vector<8x32xf32>
    %36 = arith.addf %33, %35 : vector<8x32xf32>
    %cst_23 = arith.constant 0.000000e+00 : f32
    %37 = vector.broadcast %cst_23 : f32 to vector<8x32xf32>
    %38 = arith.cmpf olt, %36, %37 : vector<8x32xf32>
    %cst_24 = arith.constant 2.000000e-01 : f32
    %39 = vector.broadcast %cst_24 : f32 to vector<8x32xf32>
    %40 = arith.mulf %39, %36 : vector<8x32xf32>
    %41 = arith.select %38, %40, %36 : vector<8x32xi1>, vector<8x32xf32>
    %cst_25 = arith.constant 1.41421354 : f32
    %42 = vector.broadcast %cst_25 : f32 to vector<8x32xf32>
    %43 = arith.mulf %41, %42 : vector<8x32xf32>
    %44 = arith.truncf %43 : vector<8x32xf32> to vector<8x32xbf16>
    %c0_26 = arith.constant 0 : index
    %c0_27 = arith.constant 0 : index
    %c0_28 = arith.constant 0 : index
    %45 = vector.load %arg7[%c0_26, %c0_27, %c0_28] : memref<7x32x32xbf16, #tpu.memory_space<vmem>>, vector<1x32x32xbf16>
    %46 = vector.shape_cast %45 : vector<1x32x32xbf16> to vector<32x32xbf16>
    %cst_29 = arith.constant dense<0.000000e+00> : vector<8x32xf32>
    %47 = tpu.matmul %44, %46, %cst_29 {dimension_numbers = #tpu.dot_dimension_numbers<[1], [0], [0], [1], [0, 0, 1, 1], [], []>} : vector<8x32xbf16>, vector<32x32xbf16>, vector<8x32xf32> -> vector<8x32xf32>
    %c0_30 = arith.constant 0 : index
    %c0_31 = arith.constant 0 : index
    %c0_32 = arith.constant 0 : index
    %48 = vector.load %arg8[%c0_30, %c0_31, %c0_32] : memref<7x1x32xf32, #tpu.memory_space<vmem>>, vector<1x1x32xf32>
    %49 = vector.shape_cast %48 : vector<1x1x32xf32> to vector<1x32xf32>
    %50 = vector.broadcast %49 : vector<1x32xf32> to vector<8x32xf32>
    %51 = arith.addf %47, %50 : vector<8x32xf32>
    %cst_33 = arith.constant 0.000000e+00 : f32
    %52 = vector.broadcast %cst_33 : f32 to vector<8x32xf32>
    %53 = arith.cmpf olt, %51, %52 : vector<8x32xf32>
    %cst_34 = arith.constant 2.000000e-01 : f32
    %54 = vector.broadcast %cst_34 : f32 to vector<8x32xf32>
    %55 = arith.mulf %54, %51 : vector<8x32xf32>
    %56 = arith.select %53, %55, %51 : vector<8x32xi1>, vector<8x32xf32>
    %cst_35 = arith.constant 1.41421354 : f32
    %57 = vector.broadcast %cst_35 : f32 to vector<8x32xf32>
    %58 = arith.mulf %56, %57 : vector<8x32xf32>
    %59 = arith.truncf %58 : vector<8x32xf32> to vector<8x32xbf16>
    %c1 = arith.constant 1 : index
    %c0_36 = arith.constant 0 : index
    %c0_37 = arith.constant 0 : index
    %60 = vector.load %arg7[%c1, %c0_36, %c0_37] : memref<7x32x32xbf16, #tpu.memory_space<vmem>>, vector<1x32x32xbf16>
    %61 = vector.shape_cast %60 : vector<1x32x32xbf16> to vector<32x32xbf16>
    %cst_38 = arith.constant dense<0.000000e+00> : vector<8x32xf32>
    %62 = tpu.matmul %59, %61, %cst_38 {dimension_numbers = #tpu.dot_dimension_numbers<[1], [0], [0], [1], [0, 0, 1, 1], [], []>} : vector<8x32xbf16>, vector<32x32xbf16>, vector<8x32xf32> -> vector<8x32xf32>
    %c1_39 = arith.constant 1 : index
    %c0_40 = arith.constant 0 : index
    %c0_41 = arith.constant 0 : index
    %63 = vector.load %arg8[%c1_39, %c0_40, %c0_41] : memref<7x1x32xf32, #tpu.memory_space<vmem>>, vector<1x1x32xf32>
    %64 = vector.shape_cast %63 : vector<1x1x32xf32> to vector<1x32xf32>
    %65 = vector.broadcast %64 : vector<1x32xf32> to vector<8x32xf32>
    %66 = arith.addf %62, %65 : vector<8x32xf32>
    %cst_42 = arith.constant 0.000000e+00 : f32
    %67 = vector.broadcast %cst_42 : f32 to vector<8x32xf32>
    %68 = arith.cmpf olt, %66, %67 : vector<8x32xf32>
    %cst_43 = arith.constant 2.000000e-01 : f32
    %69 = vector.broadcast %cst_43 : f32 to vector<8x32xf32>
    %70 = arith.mulf %69, %66 : vector<8x32xf32>
    %71 = arith.select %68, %70, %66 : vector<8x32xi1>, vector<8x32xf32>
    %cst_44 = arith.constant 1.41421354 : f32
    %72 = vector.broadcast %cst_44 : f32 to vector<8x32xf32>
    %73 = arith.mulf %71, %72 : vector<8x32xf32>
    %74 = arith.truncf %73 : vector<8x32xf32> to vector<8x32xbf16>
    %c2 = arith.constant 2 : index
    %c0_45 = arith.constant 0 : index
    %c0_46 = arith.constant 0 : index
    %75 = vector.load %arg7[%c2, %c0_45, %c0_46] : memref<7x32x32xbf16, #tpu.memory_space<vmem>>, vector<1x32x32xbf16>
    %76 = vector.shape_cast %75 : vector<1x32x32xbf16> to vector<32x32xbf16>
    %cst_47 = arith.constant dense<0.000000e+00> : vector<8x32xf32>
    %77 = tpu.matmul %74, %76, %cst_47 {dimension_numbers = #tpu.dot_dimension_numbers<[1], [0], [0], [1], [0, 0, 1, 1], [], []>} : vector<8x32xbf16>, vector<32x32xbf16>, vector<8x32xf32> -> vector<8x32xf32>
    %c2_48 = arith.constant 2 : index
    %c0_49 = arith.constant 0 : index
    %c0_50 = arith.constant 0 : index
    %78 = vector.load %arg8[%c2_48, %c0_49, %c0_50] : memref<7x1x32xf32, #tpu.memory_space<vmem>>, vector<1x1x32xf32>
    %79 = vector.shape_cast %78 : vector<1x1x32xf32> to vector<1x32xf32>
    %80 = vector.broadcast %79 : vector<1x32xf32> to vector<8x32xf32>
    %81 = arith.addf %77, %80 : vector<8x32xf32>
    %cst_51 = arith.constant 0.000000e+00 : f32
    %82 = vector.broadcast %cst_51 : f32 to vector<8x32xf32>
    %83 = arith.cmpf olt, %81, %82 : vector<8x32xf32>
    %cst_52 = arith.constant 2.000000e-01 : f32
    %84 = vector.broadcast %cst_52 : f32 to vector<8x32xf32>
    %85 = arith.mulf %84, %81 : vector<8x32xf32>
    %86 = arith.select %83, %85, %81 : vector<8x32xi1>, vector<8x32xf32>
    %cst_53 = arith.constant 1.41421354 : f32
    %87 = vector.broadcast %cst_53 : f32 to vector<8x32xf32>
    %88 = arith.mulf %86, %87 : vector<8x32xf32>
    %89 = arith.truncf %88 : vector<8x32xf32> to vector<8x32xbf16>
    %c3 = arith.constant 3 : index
    %c0_54 = arith.constant 0 : index
    %c0_55 = arith.constant 0 : index
    %90 = vector.load %arg7[%c3, %c0_54, %c0_55] : memref<7x32x32xbf16, #tpu.memory_space<vmem>>, vector<1x32x32xbf16>
    %91 = vector.shape_cast %90 : vector<1x32x32xbf16> to vector<32x32xbf16>
    %cst_56 = arith.constant dense<0.000000e+00> : vector<8x32xf32>
    %92 = tpu.matmul %89, %91, %cst_56 {dimension_numbers = #tpu.dot_dimension_numbers<[1], [0], [0], [1], [0, 0, 1, 1], [], []>} : vector<8x32xbf16>, vector<32x32xbf16>, vector<8x32xf32> -> vector<8x32xf32>
    %c3_57 = arith.constant 3 : index
    %c0_58 = arith.constant 0 : index
    %c0_59 = arith.constant 0 : index
    %93 = vector.load %arg8[%c3_57, %c0_58, %c0_59] : memref<7x1x32xf32, #tpu.memory_space<vmem>>, vector<1x1x32xf32>
    %94 = vector.shape_cast %93 : vector<1x1x32xf32> to vector<1x32xf32>
    %95 = vector.broadcast %94 : vector<1x32xf32> to vector<8x32xf32>
    %96 = arith.addf %92, %95 : vector<8x32xf32>
    %cst_60 = arith.constant 0.000000e+00 : f32
    %97 = vector.broadcast %cst_60 : f32 to vector<8x32xf32>
    %98 = arith.cmpf olt, %96, %97 : vector<8x32xf32>
    %cst_61 = arith.constant 2.000000e-01 : f32
    %99 = vector.broadcast %cst_61 : f32 to vector<8x32xf32>
    %100 = arith.mulf %99, %96 : vector<8x32xf32>
    %101 = arith.select %98, %100, %96 : vector<8x32xi1>, vector<8x32xf32>
    %cst_62 = arith.constant 1.41421354 : f32
    %102 = vector.broadcast %cst_62 : f32 to vector<8x32xf32>
    %103 = arith.mulf %101, %102 : vector<8x32xf32>
    %104 = arith.truncf %103 : vector<8x32xf32> to vector<8x32xbf16>
    %c4 = arith.constant 4 : index
    %c0_63 = arith.constant 0 : index
    %c0_64 = arith.constant 0 : index
    %105 = vector.load %arg7[%c4, %c0_63, %c0_64] : memref<7x32x32xbf16, #tpu.memory_space<vmem>>, vector<1x32x32xbf16>
    %106 = vector.shape_cast %105 : vector<1x32x32xbf16> to vector<32x32xbf16>
    %cst_65 = arith.constant dense<0.000000e+00> : vector<8x32xf32>
    %107 = tpu.matmul %104, %106, %cst_65 {dimension_numbers = #tpu.dot_dimension_numbers<[1], [0], [0], [1], [0, 0, 1, 1], [], []>} : vector<8x32xbf16>, vector<32x32xbf16>, vector<8x32xf32> -> vector<8x32xf32>
    %c4_66 = arith.constant 4 : index
    %c0_67 = arith.constant 0 : index
    %c0_68 = arith.constant 0 : index
    %108 = vector.load %arg8[%c4_66, %c0_67, %c0_68] : memref<7x1x32xf32, #tpu.memory_space<vmem>>, vector<1x1x32xf32>
    %109 = vector.shape_cast %108 : vector<1x1x32xf32> to vector<1x32xf32>
    %110 = vector.broadcast %109 : vector<1x32xf32> to vector<8x32xf32>
    %111 = arith.addf %107, %110 : vector<8x32xf32>
    %cst_69 = arith.constant 0.000000e+00 : f32
    %112 = vector.broadcast %cst_69 : f32 to vector<8x32xf32>
    %113 = arith.cmpf olt, %111, %112 : vector<8x32xf32>
    %cst_70 = arith.constant 2.000000e-01 : f32
    %114 = vector.broadcast %cst_70 : f32 to vector<8x32xf32>
    %115 = arith.mulf %114, %111 : vector<8x32xf32>
    %116 = arith.select %113, %115, %111 : vector<8x32xi1>, vector<8x32xf32>
    %cst_71 = arith.constant 1.41421354 : f32
    %117 = vector.broadcast %cst_71 : f32 to vector<8x32xf32>
    %118 = arith.mulf %116, %117 : vector<8x32xf32>
    %119 = arith.truncf %118 : vector<8x32xf32> to vector<8x32xbf16>
    %c5 = arith.constant 5 : index
    %c0_72 = arith.constant 0 : index
    %c0_73 = arith.constant 0 : index
    %120 = vector.load %arg7[%c5, %c0_72, %c0_73] : memref<7x32x32xbf16, #tpu.memory_space<vmem>>, vector<1x32x32xbf16>
    %121 = vector.shape_cast %120 : vector<1x32x32xbf16> to vector<32x32xbf16>
    %cst_74 = arith.constant dense<0.000000e+00> : vector<8x32xf32>
    %122 = tpu.matmul %119, %121, %cst_74 {dimension_numbers = #tpu.dot_dimension_numbers<[1], [0], [0], [1], [0, 0, 1, 1], [], []>} : vector<8x32xbf16>, vector<32x32xbf16>, vector<8x32xf32> -> vector<8x32xf32>
    %c5_75 = arith.constant 5 : index
    %c0_76 = arith.constant 0 : index
    %c0_77 = arith.constant 0 : index
    %123 = vector.load %arg8[%c5_75, %c0_76, %c0_77] : memref<7x1x32xf32, #tpu.memory_space<vmem>>, vector<1x1x32xf32>
    %124 = vector.shape_cast %123 : vector<1x1x32xf32> to vector<1x32xf32>
    %125 = vector.broadcast %124 : vector<1x32xf32> to vector<8x32xf32>
    %126 = arith.addf %122, %125 : vector<8x32xf32>
    %cst_78 = arith.constant 0.000000e+00 : f32
    %127 = vector.broadcast %cst_78 : f32 to vector<8x32xf32>
    %128 = arith.cmpf olt, %126, %127 : vector<8x32xf32>
    %cst_79 = arith.constant 2.000000e-01 : f32
    %129 = vector.broadcast %cst_79 : f32 to vector<8x32xf32>
    %130 = arith.mulf %129, %126 : vector<8x32xf32>
    %131 = arith.select %128, %130, %126 : vector<8x32xi1>, vector<8x32xf32>
    %cst_80 = arith.constant 1.41421354 : f32
    %132 = vector.broadcast %cst_80 : f32 to vector<8x32xf32>
    %133 = arith.mulf %131, %132 : vector<8x32xf32>
    %134 = arith.truncf %133 : vector<8x32xf32> to vector<8x32xbf16>
    %c6 = arith.constant 6 : index
    %c0_81 = arith.constant 0 : index
    %c0_82 = arith.constant 0 : index
    %135 = vector.load %arg7[%c6, %c0_81, %c0_82] : memref<7x32x32xbf16, #tpu.memory_space<vmem>>, vector<1x32x32xbf16>
    %136 = vector.shape_cast %135 : vector<1x32x32xbf16> to vector<32x32xbf16>
    %cst_83 = arith.constant dense<0.000000e+00> : vector<8x32xf32>
    %137 = tpu.matmul %134, %136, %cst_83 {dimension_numbers = #tpu.dot_dimension_numbers<[1], [0], [0], [1], [0, 0, 1, 1], [], []>} : vector<8x32xbf16>, vector<32x32xbf16>, vector<8x32xf32> -> vector<8x32xf32>
    %c6_84 = arith.constant 6 : index
    %c0_85 = arith.constant 0 : index
    %c0_86 = arith.constant 0 : index
    %138 = vector.load %arg8[%c6_84, %c0_85, %c0_86] : memref<7x1x32xf32, #tpu.memory_space<vmem>>, vector<1x1x32xf32>
    %139 = vector.shape_cast %138 : vector<1x1x32xf32> to vector<1x32xf32>
    %140 = vector.broadcast %139 : vector<1x32xf32> to vector<8x32xf32>
    %141 = arith.addf %137, %140 : vector<8x32xf32>
    %cst_87 = arith.constant 0.000000e+00 : f32
    %142 = vector.broadcast %cst_87 : f32 to vector<8x32xf32>
    %143 = arith.cmpf olt, %141, %142 : vector<8x32xf32>
    %cst_88 = arith.constant 2.000000e-01 : f32
    %144 = vector.broadcast %cst_88 : f32 to vector<8x32xf32>
    %145 = arith.mulf %144, %141 : vector<8x32xf32>
    %146 = arith.select %143, %145, %141 : vector<8x32xi1>, vector<8x32xf32>
    %cst_89 = arith.constant 1.41421354 : f32
    %147 = vector.broadcast %cst_89 : f32 to vector<8x32xf32>
    %148 = arith.mulf %146, %147 : vector<8x32xf32>
    %149 = tpu.concatenate %148, %148, %148, %148 in 1 : vector<8x32xf32>, vector<8x32xf32>, vector<8x32xf32>, vector<8x32xf32> -> vector<8x128xf32>
    %c0_90 = arith.constant 0 : index
    %c0_91 = arith.constant 0 : index
    %150 = vector.load %arg9[%c0_90, %c0_91] : memref<8x128xf32, #tpu.memory_space<vmem>>, vector<8x128xf32>
    tpu.vector_store %arg9[%c0_90, %c0_91], %149 {strides = array<i32>} : memref<8x128xf32, #tpu.memory_space<vmem>>, vector<8x128xf32>,
    return
  }
  func.func @transform_0(%arg0: i32) -> (i32, i32) {
    %c0_i32 = arith.constant 0 : i32
    %c0_i32_0 = arith.constant 0 : i32
    return %arg0, %c0_i32 : i32, i32
  }
  func.func @transform_1(%arg0: i32) -> (i32, i32) {
    %c0_i32 = arith.constant 0 : i32
    %c0_i32_0 = arith.constant 0 : i32
    return %arg0, %c0_i32 : i32, i32
  }
  func.func @transform_2(%arg0: i32) -> (i32, i32) {
    %c0_i32 = arith.constant 0 : i32
    %c0_i32_0 = arith.constant 0 : i32
    %c0_i32_1 = arith.constant 0 : i32
    return %c0_i32, %c0_i32_0 : i32, i32
  }
  func.func @transform_3(%arg0: i32) -> (i32, i32) {
    %c0_i32 = arith.constant 0 : i32
    %c0_i32_0 = arith.constant 0 : i32
    %c0_i32_1 = arith.constant 0 : i32
    return %c0_i32, %c0_i32_0 : i32, i32
  }
  func.func @transform_4(%arg0: i32) -> (i32, i32) {
    %c0_i32 = arith.constant 0 : i32
    %c0_i32_0 = arith.constant 0 : i32
    %c0_i32_1 = arith.constant 0 : i32
    return %c0_i32, %c0_i32_0 : i32, i32
  }
  func.func @transform_5(%arg0: i32) -> (i32, i32) {
    %c0_i32 = arith.constant 0 : i32
    %c0_i32_0 = arith.constant 0 : i32
    %c0_i32_1 = arith.constant 0 : i32
    return %c0_i32, %c0_i32_0 : i32, i32
  }
  func.func @transform_6(%arg0: i32) -> (i32, i32, i32) {
    %c0_i32 = arith.constant 0 : i32
    %c0_i32_0 = arith.constant 0 : i32
    %c0_i32_1 = arith.constant 0 : i32
    %c0_i32_2 = arith.constant 0 : i32
    return %c0_i32, %c0_i32_0, %c0_i32_1 : i32, i32, i32
  }
  func.func @transform_7(%arg0: i32) -> (i32, i32, i32) {
    %c0_i32 = arith.constant 0 : i32
    %c0_i32_0 = arith.constant 0 : i32
    %c0_i32_1 = arith.constant 0 : i32
    %c0_i32_2 = arith.constant 0 : i32
    return %c0_i32, %c0_i32_0, %c0_i32_1 : i32, i32, i32
  }
  func.func @transform_8(%arg0: i32) -> (i32, i32) {
    %c0_i32 = arith.constant 0 : i32
    %c0_i32_0 = arith.constant 0 : i32
    return %arg0, %c0_i32 : i32, i32
  }
}

</mosaic_0001>

<bundles_post_ra>
// kernel: tpu_custom_call.1
= control target key start
LH: loop header
LB: loop body
LE: loop exit
PB: predicated region body
PF: predicated region fallthrough
CT: control target
= control target key end

     0   :  { %13 = vsyncpa [#allocation4], 0  ;;  %s1159_s0 = inlined_call_operand.vmem [shape: f32[8,32], index: 0, kind: input, shape index: {}]   ;;  %s1160_s1 = inlined_call_operand.vmem [shape: f32[8,8], index: 1, kind: input, shape index: {}]   ;;  %s1161_s2 = inlined_call_operand.vmem [shape: bf16[8,32], index: 2, kind: input, shape index: {}]   ;;  %s1162_s3 = inlined_call_operand.vmem [shape: f32[1,32], index: 3, kind: input, shape index: {}]   ;;  %s1163_s4 = inlined_call_operand.vmem [shape: bf16[64,32], index: 4, kind: input, shape index: {}]   ;;  %s1164_s5 = inlined_call_operand.vmem [shape: f32[1,32], index: 5, kind: input, shape index: {}]   ;;  %s1165_s6 = inlined_call_operand.hbm [shape: bf16[7,32,32], index: 6, kind: input, shape index: {}]   ;;  %s1166_s7 = inlined_call_operand.vmem [shape: f32[7,1,32], index: 7, kind: input, shape index: {}]   ;;  %s1167_s8 = inlined_call_operand.hbm [shape: f32[8,128], index: 8, kind: output, shape index: {}]  }
   0x1   :  { %14 = vsyncpa [#allocation5], 0  ;;  %s979_s27 = smov [#allocation3]   ;;  %s931_s9 = scalar_lea.hbm %s1165_s6, 1792 }
   0x2   :  { %s32_s28 = sshll.u32 %s979_s27, 4  ;;  %p932_p0 = scmp.ne.s32.totalorder %s1165_s6, %s931_s9  ;;  %s33_s28 = int_to_ptr.vmem [resolvable:$true] %s32_s28 }
   0x3   :  { %p935_p1 = scmp.lt.u32.totalorder %s931_s9, %s1165_s6 }
   0x5   :  { %p937_p2 = pnand %p935_p1, %p932_p0 }
   0x7   :  { %940 = shalt.err (!%p937_p2)
}
   0x8   :  { %s941_s14 = scalar_lea.vmem %s33_s28, 1792  ;;  %p946_p4 = scmp.lt.s32.totalorder %s33_s28, %s33_s28 }
   0x9   :  { %p942_p3 = scmp.ne.s32.totalorder %s33_s28, %s941_s14  ;;  %p947_p5 = scmp.lt.s32.totalorder %s941_s14, %s941_s14 }
   0xb   :  { %p948_p6 = por %p947_p5, %p946_p4 }
   0xd   :  { %p949_p7 = pnand %p948_p6, %p942_p3 }
   0xf   :  { %952 = shalt.err (!%p949_p7)
}
  0x10   :  { %s980_s15 = smov 64   ;;  %s981_s16 = smov 4  }
  0x11   :  { %38 = dma.hbm_to_vmem [thread:$0]  %s1165_s6, 1792, %s33_s28, [#allocation4], %s980_s15, %s980_s15, %s981_s16  }
  0x12   :  { %975 = dma.done.wait [#allocation4], 1792  }
  0x13   :  { %976 = vsyncadd [#allocation4], 4294965504  ;;  %v982_v0 = vmov 0.0   ;;  %vm983_vm0 = vmmov 0   ;;  %vm70_vm1 = vcmask 1043456   ;;  %v56_v2 = vld [vmem:[%s1160_s1] sm:$0xff] }
  0x14   :  { %827 = vmatprep.subr.bf16.mxu0 %v982_v0  ;;  %829 = vmatprep.mubr.msk.bf16.mxu0 %vm983_vm0, %v982_v0  ;;  %v58_v1 = vld [vmem:[%s1161_s2] sm:$0xf]  ;;  %v57_v4 = vpack.c.bf16 %v56_v2, %v56_v2  ;;  %vm66_vm2 = vcmask 64512   ;;  %vm47_vm3 = vcmask 261120   ;;  %v910_v17 = vld [vmem:[%s1163_s4 + $0x8] sm:$0xff]   ;;  %v911_v23 = vld [vmem:[%s1163_s4 + $0x10] sm:$0xff]  }
  0x15   :  { %833 = vmatprep.subr.bf16.mxu1 %v982_v0  ;;  %841 = vmatprep.mubr.msk.bf16.mxu1 %vm983_vm0, %v982_v0  ;;  %v72_v3 = vsel %vm70_vm1, %v58_v1, 0  ;;  %v757_v5 = vld [vmem:[%s1162_s3] ss:$0 sm:$0xff]  ;;  %v912_v25 = vld [vmem:[%s1163_s4 + $0x18] sm:$0xff]   ;;  %s984_s30 = smov 32   ;;  %vm127_vm4 = vcmask 523520  }
  0x16   :  { %828 = vmatpush3.bf16.msra.mxu0 %v72_v3  ;;  %v45_v7 = vld [vmem:[%s1159_s0] sm:$0xff]  ;;  %vm170_vm5 = vcmask 523264   ;;  %v913_v33 = vld [vmem:[#allocation3] sm:$0xff]   ;;  %v914_v34 = vld [vmem:[#allocation3 + $0x8] sm:$0xff]   ;;  %s985_s23 = smov 96   ;;  %vm739_vm14 = vcmask 785408  }
  0x17   :  { %845 = vmatprep.subr.bf16.mxu0 %v982_v0  ;;  %v46_v13 = vmul.f32 %v45_v7, %v45_v7  ;;  %v909_v16 = vld [vmem:[%s1163_s4] sm:$0xff]   ;;  %v915_v45 = vld [vmem:[#allocation3 + $0x10] sm:$0xff]   ;;  %v917_v57 = vld [vmem:[#allocation3 + $0x20] sm:$0xff]  }
  0x18   :  { %834 = vmatpush3.bf16.msra.mxu1 %v909_v16  ;;  %v759_v35 = vld [vmem:[%s1164_s5] ss:$0 sm:$0xff]  ;;  %v918_v58 = vld [vmem:[#allocation3 + $0x28] sm:$0xff]   ;;  %v770_v59 = vld [vmem:[%s1166_s7 + $0x1] ss:$0 sm:$0xff] }
  0x19   :  { %830 = vmatmul.mubr.msk.bf16.vlgmr.msra.gmra.mrb[0].mxu0 %vm66_vm2, %v57_v4  ;;  %v48_v15 = vsel %vm47_vm3, %v46_v13, 0.0  ;;  %835 = vmatprep.subr.bf16.mxu1 %v982_v0  ;;  %v916_v46 = vld [vmem:[#allocation3 + $0x18] sm:$0xff]  }
  0x1a   :  { %849 = vmatprep.mubr.msk.bf16.mxu0 %vm983_vm0, %v982_v0  ;;  %846 = vmatpush3.bf16.msra.mxu0 %v913_v33  ;;  %v765_v47 = vld [vmem:[%s1166_s7] ss:$0 sm:$0xff] }
  0x1b   :  { %847 = vmatprep.subr.bf16.mxu0 %v982_v0 }
  0x1c   :  { %836 = vmatpush3.bf16.msra.mxu1 %v910_v17 }
  0x1d   :  { %837 = vmatprep.subr.bf16.mxu1 %v982_v0 }
  0x1e   :  { %848 = vmatpush3.bf16.msra.mxu0 %v914_v34 }
  0x1f   :  { %853 = vmatprep.subr.bf16.mxu0 %v982_v0 }
  0x20   :  { %838 = vmatpush3.bf16.msra.mxu1 %v911_v23 }
  0x21   :  { %839 = vmatprep.subr.bf16.mxu1 %v982_v0 }
  0x24   :  { %840 = vmatpush3.bf16.msra.mxu1 %v912_v25 }
  0x25   :  { %861 = vmatprep.subr.bf16.mxu1 %v982_v0 }
  0xec   :  { %v108_v6 = vpop.f32.mrb[0].mxu0 }
  0xed   :  { %v109_v8 = vadd.f32 %v757_v5, %v108_v6  ;;  %v831_v9 = vpop.f32.mrb[1].mxu0  ;;  %v919_v6 = vld [vmem:[#allocation3 + $0x30] sm:$0xff]  }
  0xee   :  { %v111_v10 = vpop.f32.mrb[2].mxu0 }
  0xef   :  { %v832_v11 = vpop.f32.mrb[3].mxu0  ;;  %v114_v12 = vmul.f32 %v109_v8, %v109_v8 }
  0xf1   :  { %v115_v14 = vsel %vm47_vm3, %v114_v12, 0.0 }
  0xf2   :  { %116 = vadd.xlane.f32.xlu0 %v115_v14 }
  0xf6   :  { %49 = vadd.xlane.f32.xlu0 %v48_v15 }
 0x17f   :  { %v117_v18 = vpop.xlane.xlu0 %116 }
 0x180   :  { %v118_v19 = vmul.f32 0.03125, %v117_v18  ;;  %v921_v18 = vld [vmem:[#allocation3 + $0x40] sm:$0xff]  }
 0x182   :  { %v119_v20 = vadd.f32 1e-08, %v118_v19  ;;  %v922_v19 = vld [vmem:[#allocation3 + $0x48] sm:$0xff]  }
 0x183   :  { %v50_v21 = vpop.xlane.xlu0 %49 }
 0x184   :  { %927 = vrsqrt.f32 %v119_v20  ;;  %v52_v22 = vmul.f32 0.03125, %v50_v21  ;;  %v780_v20 = vld [vmem:[%s1166_s7 + $0x3] ss:$0 sm:$0xff] }
 0x186   :  { %v53_v24 = vadd.f32 1e-08, %v52_v22 }
 0x188   :  { %929 = vrsqrt.f32 %v53_v24 }
 0x18e   :  { %v928_v26 = vpop.eup %927 }
 0x18f   :  { %v121_v27 = vmul.f32 %v928_v26, %v109_v8  ;;  %v775_v8 = vld [vmem:[%s1166_s7 + $0x2] ss:$0 sm:$0xff] }
 0x191   :  { %124 = vrot.lane.b32.xlu1 %v121_v27, %s984_s30 }
 0x192   :  { %v930_v28 = vpop.eup %929 }
 0x193   :  { %v55_v29 = vmul.f32 %v930_v28, %v45_v7  ;;  %v920_v7 = vld [vmem:[#allocation3 + $0x38] sm:$0xff]  }
 0x195   :  { %122 = vst.msk [vmem:[#allocation2] sm:$0xff] %vm47_vm3, %v55_v29 }
 0x203   :  { %v125_v30 = vpop.permute.xlu1 %124 }
 0x204   :  { %128 = vst.msk [vmem:[#allocation2] sm:$0xff] %vm127_vm4, %v125_v30  ;;  %v923_v30 = vld [vmem:[#allocation3 + $0x50] sm:$0xff]  }
 0x20b   :  { %v129_v31 = vld [vmem:[#allocation2] sm:$0xff] }
 0x20c   :  { %v130_v32 = vpack.c.bf16 %v129_v31, %v129_v31  ;;  %v924_v31 = vld [vmem:[#allocation3 + $0x58] sm:$0xff]  }
 0x20e   :  { %842 = vmatmul.mubr.msk.bf16.vlgmr.msra.gmra.mrb[0].mxu1 %vm170_vm5, %v130_v32  ;;  %v785_v32 = vld [vmem:[%s1166_s7 + $0x4] ss:$0 sm:$0xff] }
 0x20f   :  { %865 = vmatprep.mubr.msk.bf16.mxu1 %vm983_vm0, %v982_v0  ;;  %862 = vmatpush3.bf16.msra.mxu1 %v917_v57 }
 0x210   :  { %863 = vmatprep.subr.bf16.mxu1 %v982_v0 }
 0x213   :  { %864 = vmatpush3.bf16.msra.mxu1 %v918_v58 }
 0x214   :  { %877 = vmatprep.subr.bf16.mxu1 %v982_v0 }
 0x2e1   :  { %v208_v36 = vpop.f32.mrb[0].mxu1 }
 0x2e2   :  { %v209_v37 = vadd.f32 %v759_v35, %v208_v36  ;;  %v843_v38 = vpop.f32.mrb[1].mxu1 }
 0x2e3   :  { %v211_v39 = vpop.f32.mrb[2].mxu1 }
 0x2e4   :  { %vm214_vm6 = vcmp.lt.f32.partialorder %v209_v37, 0.0  ;;  %v215_v40 = vmul.f32 0.2, %v209_v37  ;;  %v844_v41 = vpop.f32.mrb[3].mxu1 }
 0x2e6   :  { %v216_v42 = vsel %vm214_vm6, %v215_v40, %v209_v37 }
 0x2e7   :  { %v217_v43 = vmul.f32 1.4142135, %v216_v42  ;;  %v925_v42 = vld [vmem:[#allocation3 + $0x60] sm:$0xff]  }
 0x2e9   :  { %v218_v44 = vpack.c.bf16 %v217_v43, %v217_v43  ;;  %v926_v43 = vld [vmem:[#allocation3 + $0x68] sm:$0xff]  }
 0x2eb   :  { %850 = vmatmul.mubr.msk.bf16.vlgmr.msra.gmra.mrb[4].mxu0 %vm47_vm3, %v218_v44  ;;  %v790_v44 = vld [vmem:[%s1166_s7 + $0x5] ss:$0 sm:$0xff] }
 0x2ec   :  { %857 = vmatprep.mubr.msk.bf16.mxu0 %vm983_vm0, %v982_v0  ;;  %854 = vmatpush3.bf16.msra.mxu0 %v915_v45 }
 0x2ed   :  { %855 = vmatprep.subr.bf16.mxu0 %v982_v0 }
 0x2f0   :  { %856 = vmatpush3.bf16.msra.mxu0 %v916_v46 }
 0x2f1   :  { %869 = vmatprep.subr.bf16.mxu0 %v982_v0 }
 0x3be   :  { %v279_v48 = vpop.f32.mrb[4].mxu0 }
 0x3bf   :  { %v280_v49 = vadd.f32 %v765_v47, %v279_v48  ;;  %v851_v50 = vpop.f32.mrb[5].mxu0 }
 0x3c0   :  { %v282_v51 = vpop.f32.mrb[6].mxu0 }
 0x3c1   :  { %vm285_vm7 = vcmp.lt.f32.partialorder %v280_v49, 0.0  ;;  %v286_v52 = vmul.f32 0.2, %v280_v49  ;;  %v852_v53 = vpop.f32.mrb[7].mxu0 }
 0x3c3   :  { %v287_v54 = vsel %vm285_vm7, %v286_v52, %v280_v49 }
 0x3c4   :  { %v288_v55 = vmul.f32 1.4142135, %v287_v54 }
 0x3c6   :  { %v289_v56 = vpack.c.bf16 %v288_v55, %v288_v55 }
 0x3c8   :  { %858 = vmatmul.mubr.msk.bf16.vlgmr.msra.gmra.mrb[8].mxu0 %vm47_vm3, %v289_v56 }
 0x3c9   :  { %873 = vmatprep.mubr.msk.bf16.mxu0 %vm983_vm0, %v982_v0  ;;  %870 = vmatpush3.bf16.msra.mxu0 %v919_v6 }
 0x3ca   :  { %871 = vmatprep.subr.bf16.mxu0 %v982_v0 }
 0x3cd   :  { %872 = vmatpush3.bf16.msra.mxu0 %v920_v7 }
 0x3ce   :  { %885 = vmatprep.subr.bf16.mxu0 %v982_v0 }
 0x49b   :  { %v352_v60 = vpop.f32.mrb[8].mxu0 }
 0x49c   :  { %v353_v61 = vadd.f32 %v770_v59, %v352_v60  ;;  %v859_v62 = vpop.f32.mrb[9].mxu0 }
 0x49d   :  { %v355_v63 = vpop.f32.mrb[10].mxu0 }
 0x49e   :  { %vm358_vm8 = vcmp.lt.f32.partialorder %v353_v61, 0.0  ;;  %v359_v1 = vmul.f32 0.2, %v353_v61  ;;  %v860_v2 = vpop.f32.mrb[11].mxu0 }
 0x4a0   :  { %v360_v3 = vsel %vm358_vm8, %v359_v1, %v353_v61 }
 0x4a1   :  { %v361_v4 = vmul.f32 1.4142135, %v360_v3 }
 0x4a3   :  { %v362_v5 = vpack.c.bf16 %v361_v4, %v361_v4 }
 0x4a5   :  { %866 = vmatmul.mubr.msk.bf16.vlgmr.msra.gmra.mrb[4].mxu1 %vm47_vm3, %v362_v5 }
 0x4a6   :  { %881 = vmatprep.mubr.msk.bf16.mxu1 %vm983_vm0, %v982_v0  ;;  %878 = vmatpush3.bf16.msra.mxu1 %v921_v18 }
 0x4a7   :  { %879 = vmatprep.subr.bf16.mxu1 %v982_v0 }
 0x4aa   :  { %880 = vmatpush3.bf16.msra.mxu1 %v922_v19 }
 0x4ab   :  { %893 = vmatprep.subr.bf16.mxu1 %v982_v0 }
 0x578   :  { %v425_v9 = vpop.f32.mrb[4].mxu1 }
 0x579   :  { %v426_v10 = vadd.f32 %v775_v8, %v425_v9  ;;  %v867_v11 = vpop.f32.mrb[5].mxu1 }
 0x57a   :  { %v428_v12 = vpop.f32.mrb[6].mxu1 }
 0x57b   :  { %vm431_vm9 = vcmp.lt.f32.partialorder %v426_v10, 0.0  ;;  %v432_v13 = vmul.f32 0.2, %v426_v10  ;;  %v868_v14 = vpop.f32.mrb[7].mxu1 }
 0x57d   :  { %v433_v15 = vsel %vm431_vm9, %v432_v13, %v426_v10 }
 0x57e   :  { %v434_v16 = vmul.f32 1.4142135, %v433_v15 }
 0x580   :  { %v435_v17 = vpack.c.bf16 %v434_v16, %v434_v16 }
 0x582   :  { %874 = vmatmul.mubr.msk.bf16.vlgmr.msra.gmra.mrb[12].mxu0 %vm47_vm3, %v435_v17 }
 0x583   :  { %889 = vmatprep.mubr.msk.bf16.mxu0 %vm983_vm0, %v982_v0  ;;  %886 = vmatpush3.bf16.msra.mxu0 %v923_v30 }
 0x584   :  { %887 = vmatprep.subr.bf16.mxu0 %v982_v0 }
 0x587   :  { %888 = vmatpush3.bf16.msra.mxu0 %v924_v31 }
 0x655   :  { %v498_v21 = vpop.f32.mrb[12].mxu0 }
 0x656   :  { %v499_v22 = vadd.f32 %v780_v20, %v498_v21  ;;  %v875_v23 = vpop.f32.mrb[13].mxu0 }
 0x657   :  { %v501_v24 = vpop.f32.mrb[14].mxu0 }
 0x658   :  { %vm504_vm10 = vcmp.lt.f32.partialorder %v499_v22, 0.0  ;;  %v505_v25 = vmul.f32 0.2, %v499_v22  ;;  %v876_v26 = vpop.f32.mrb[15].mxu0 }
 0x65a   :  { %v506_v27 = vsel %vm504_vm10, %v505_v25, %v499_v22 }
 0x65b   :  { %v507_v28 = vmul.f32 1.4142135, %v506_v27 }
 0x65d   :  { %v508_v29 = vpack.c.bf16 %v507_v28, %v507_v28 }
 0x65f   :  { %882 = vmatmul.mubr.msk.bf16.vlgmr.msra.gmra.mrb[8].mxu1 %vm47_vm3, %v508_v29 }
 0x660   :  { %897 = vmatprep.mubr.msk.bf16.mxu1 %vm983_vm0, %v982_v0  ;;  %894 = vmatpush3.bf16.msra.mxu1 %v925_v42 }
 0x661   :  { %895 = vmatprep.subr.bf16.mxu1 %v982_v0  ;;  %v795_v0 = vld [vmem:[%s1166_s7 + $0x6] ss:$0 sm:$0xff]  ;;  %s986_s7 = smov [#allocation6]  }
 0x662   :  { %s748_s2 = sshll.u32 %s986_s7, 4  ;;  %s749_s2 = int_to_ptr.vmem [resolvable:$true] %s748_s2 }
 0x663   :  { %s953_s24 = scalar_lea.vmem %s749_s2, 128  ;;  %p958_p9 = scmp.lt.s32.totalorder %s749_s2, %s749_s2 }
 0x664   :  { %896 = vmatpush3.bf16.msra.mxu1 %v926_v43  ;;  %p954_p8 = scmp.ne.s32.totalorder %s749_s2, %s953_s24  ;;  %p959_p10 = scmp.lt.s32.totalorder %s953_s24, %s953_s24 }
 0x666   :  { %p960_p11 = por %p959_p10, %p958_p9 }
 0x668   :  { %p961_p12 = pnand %p960_p11, %p954_p8 }
 0x732   :  { %v571_v33 = vpop.f32.mrb[8].mxu1 }
 0x733   :  { %v572_v34 = vadd.f32 %v785_v32, %v571_v33  ;;  %v883_v35 = vpop.f32.mrb[9].mxu1 }
 0x734   :  { %v574_v36 = vpop.f32.mrb[10].mxu1 }
 0x735   :  { %vm577_vm11 = vcmp.lt.f32.partialorder %v572_v34, 0.0  ;;  %v578_v37 = vmul.f32 0.2, %v572_v34  ;;  %v884_v38 = vpop.f32.mrb[11].mxu1 }
 0x737   :  { %v579_v39 = vsel %vm577_vm11, %v578_v37, %v572_v34 }
 0x738   :  { %v580_v40 = vmul.f32 1.4142135, %v579_v39 }
 0x73a   :  { %v581_v41 = vpack.c.bf16 %v580_v40, %v580_v40 }
 0x73c   :  { %890 = vmatmul.mubr.msk.bf16.vlgmr.msra.gmra.mrb[16].mxu0 %vm47_vm3, %v581_v41 }
 0x80f   :  { %v644_v45 = vpop.f32.mrb[16].mxu0 }
 0x810   :  { %v645_v46 = vadd.f32 %v790_v44, %v644_v45  ;;  %v891_v47 = vpop.f32.mrb[17].mxu0 }
 0x811   :  { %v647_v48 = vpop.f32.mrb[18].mxu0 }
 0x812   :  { %vm650_vm12 = vcmp.lt.f32.partialorder %v645_v46, 0.0  ;;  %v651_v49 = vmul.f32 0.2, %v645_v46  ;;  %v892_v50 = vpop.f32.mrb[19].mxu0 }
 0x814   :  { %v652_v51 = vsel %vm650_vm12, %v651_v49, %v645_v46 }
 0x815   :  { %v653_v52 = vmul.f32 1.4142135, %v652_v51 }
 0x817   :  { %v654_v53 = vpack.c.bf16 %v653_v52, %v653_v52 }
 0x819   :  { %898 = vmatmul.mubr.msk.bf16.vlgmr.msra.gmra.mrb[12].mxu1 %vm47_vm3, %v654_v53 }
 0x8ec   :  { %v717_v54 = vpop.f32.mrb[12].mxu1 }
 0x8ed   :  { %v718_v55 = vadd.f32 %v795_v0, %v717_v54  ;;  %v899_v56 = vpop.f32.mrb[13].mxu1 }
 0x8ee   :  { %v720_v57 = vpop.f32.mrb[14].mxu1 }
 0x8ef   :  { %vm723_vm13 = vcmp.lt.f32.partialorder %v718_v55, 0.0  ;;  %v724_v58 = vmul.f32 0.2, %v718_v55  ;;  %v900_v59 = vpop.f32.mrb[15].mxu1 }
 0x8f1   :  { %v725_v60 = vsel %vm723_vm13, %v724_v58, %v718_v55 }
 0x8f2   :  { %v726_v61 = vmul.f32 1.4142135, %v725_v60 }
 0x8f4   :  { %731 = vrot.lane.b32.xlu0 %v726_v61, %s980_s15  ;;  %728 = vrot.lane.b32.xlu1 %v726_v61, %s984_s30 }
 0x8f8   :  { %734 = vrot.lane.b32.xlu1 %v726_v61, %s985_s23 }
 0x966   :  { %v729_v62 = vpop.permute.xlu1 %728  ;;  %v732_v63 = vpop.permute.xlu0 %731 }
 0x967   :  { %v737_v1 = vsel %vm47_vm3, %v726_v61, %v729_v62 }
 0x968   :  { %v738_v2 = vsel %vm170_vm5, %v737_v1, %v732_v63 }
 0x96a   :  { %v735_v3 = vpop.permute.xlu1 %734 }
 0x96b   :  { %v740_v4 = vsel %vm739_vm14, %v738_v2, %v735_v3 }
 0x96c   :  { %741 = vst [vmem:[#allocation6] sm:$0xff] %v740_v4 }
 0x96d   :  { %964 = shalt.err (!%p961_p12)
}
 0x96e   :  { %s965_s3 = scalar_lea.hbm %s1167_s8, 128 }
 0x96f   :  { %p966_p13 = scmp.ne.s32.totalorder %s1167_s8, %s965_s3  ;;  %p969_p0 = scmp.lt.u32.totalorder %s965_s3, %s1167_s8 }
 0x971   :  { %p971_p1 = pnand %p969_p0, %p966_p13 }
 0x973   :  { %974 = shalt.err (!%p971_p1)
}
 0x974   :  { %751 = dma.vmem_to_hbm [thread:$0]  %s749_s2, 128, %s1167_s8, [#allocation5]  }
 0x975   :  { %977 = dma.done.wait [#allocation5], 128  }
 0x976   :  { %978 = vsyncadd [#allocation5], 4294967168 }
 0x977   :  { %755 = vsyncpa [#allocation4], 1 }
 0x978   :  { %756 = vsyncpa [#allocation5], 1 }

</bundles_post_ra>
